<compile_context>
chip_gen: v7x
topology: tpu7x:2x2x1
jax: 0.10.0
libtpu: 0.0.40
codegen_flags: <defaults>
</compile_context>

<pallas_src>
import jax
import jax.numpy as jnp
from jax.experimental import pallas as pl
from jax.experimental.pallas import tpu as pltpu


def _round_up(x: int, m: int) -> int:
    return (x + m - 1) // m * m


def _sublane_multiple(dtype) -> int:
    # 8 rows for f32, 16 for bf16, 32 for int8/fp8 (packed-sublane granularity).
    return max(8, 32 // jnp.dtype(dtype).itemsize)


def _vmem_budget_bytes() -> int:
    cap = 64 * 1024 * 1024  # conservative fallback (v7x per-core physical VMEM)
    try:
        info = pltpu.get_tpu_info()
        cap = int(getattr(info, "vmem_capacity_bytes", cap)) or cap
    except Exception:
        pass
    # Leave headroom for compiler-internal scratch.
    return max(3 * cap // 4, 12 * 1024 * 1024)


def _make_kernel(module_factor: float, input_factor: float, cast_matmul_to_bf16: bool):
    """o = (x @ W + b) * module_factor + x * input_factor  (single N tile)."""
    mf = float(module_factor)
    inf = float(input_factor)

    def kernel(x_ref, w_ref, b_ref, o_ref):
        x = x_ref[...]
        w = w_ref[...]
        if cast_matmul_to_bf16 and x.dtype == jnp.float32:
            xd, wd = x.astype(jnp.bfloat16), w.astype(jnp.bfloat16)
        else:
            xd, wd = x, w
        y = jnp.dot(xd, wd, preferred_element_type=jnp.float32)
        y = y + b_ref[...]                       # bias kept in f32 (1, H)
        if mf != 1.0:
            y = y * mf                           # Python-float literal, not a const
        if inf != 0.0:
            r = x.astype(jnp.float32)
            if inf != 1.0:
                r = r * inf
            y = y + r
        o_ref[...] = y.astype(o_ref.dtype)

    return kernel


def _make_kernel_ntiled(module_factor: float, input_factor: float, col_tile: int,
                        cast_matmul_to_bf16: bool):
    """Same computation, with W / bias / output streamed in (H, tn) column panels."""
    mf = float(module_factor)
    inf = float(input_factor)
    tn = int(col_tile)

    def kernel(x_ref, w_ref, b_ref, o_ref):
        x = x_ref[...]                            # (tm, H)  -- full K resident
        w = w_ref[...]                            # (H, tn)
        if cast_matmul_to_bf16 and x.dtype == jnp.float32:
            xd, wd = x.astype(jnp.bfloat16), w.astype(jnp.bfloat16)
        else:
            xd, wd = x, w
        y = jnp.dot(xd, wd, preferred_element_type=jnp.float32)   # (tm, tn)
        y = y + b_ref[...]
        if mf != 1.0:
            y = y * mf
        if inf != 0.0:
            off = pl.multiple_of(pl.program_id(1) * tn, 128)
            r = x_ref[:, pl.ds(off, tn)].astype(jnp.float32)
            if inf != 1.0:
                r = r * inf
            y = y + r
        o_ref[...] = y.astype(o_ref.dtype)

    return kernel


def residual_connection_forward(x, w, b, *, module_factor=1.0, input_factor=1.0,
                                row_tile=None, col_tile=None,
                                cast_matmul_to_bf16=False):
    """out = (x @ w + b) * module_factor + x * input_factor.

    x: (B, S, H); w: (H, H); b: (H,).  Returns (B, S, H) in x.dtype with f32
    accumulation.  module_factor / input_factor must be static Python scalars
    (they are module hyperparameters, as in the PyTorch module).
    """
    B, S, H = x.shape
    assert w.shape == (H, H) and b.shape == (H,)
    rows = B * S
    dtype = x.dtype

    x2 = x.reshape(rows, H)                       # contiguous -> no copy
    b2 = b.astype(jnp.float32).reshape(1, H)      # tiny; keeps the in-kernel add in f32

    x_item = jnp.dtype(dtype).itemsize
    w_item = jnp.dtype(w.dtype).itemsize
    budget = _vmem_budget_bytes()
    mult = _sublane_multiple(dtype)

    # ---- choose single-N (resident W) vs. N-tiled (streamed W) ----------------
    w_bytes = H * H * w_item
    use_ntiled, tn = False, None
    if col_tile is not None:
        if H % 128 == 0 and col_tile % 128 == 0 and H % col_tile == 0 and col_tile < H:
            use_ntiled, tn = True, int(col_tile)
    elif H % 128 == 0 and w_bytes > budget // 4:
        for cand in (2048, 1024, 512, 256, 128):
            if cand < H and H % cand == 0:
                use_ntiled, tn = True, cand
                break
    # TODO(synk): if K itself ever has to be split (single (H, tn) panel too big),
    # add a K grid axis with an f32 accumulator scratch and pl.when init/finalize.

    # ---- row tile: as large as the VMEM budget allows, sublane-aligned --------
    tm = row_tile if row_tile is not None else 1024
    tm = _round_up(min(int(tm), _round_up(rows, mult)), mult)

    fudge = 2 * 1024 * 1024
    if use_ntiled:
        def footprint(t):
            return (2 * t * H * x_item            # x row tiles (double buffered)
                    + 2 * H * tn * w_item         # W column panels (double buffered)
                    + 2 * t * tn * x_item         # out tiles (double buffered)
                    + 2 * tn * 4                  # bias panels (f32)
                    + fudge)
    else:
        def footprint(t):
            return (2 * t * H * x_item            # x row tiles (double buffered)
                    + 2 * t * H * x_item          # out tiles (double buffered)
                    + 1 * H * H * w_item          # resident W (Buffered(1))
                    + 1 * H * 4                   # resident bias (f32)
                    + fudge)

    while tm > mult and footprint(tm) > budget:
        tm -= mult

    grid_rows = pl.cdiv(rows, tm)                 # ragged tail handled by masked stores

    if use_ntiled:
        kernel = _make_kernel_ntiled(module_factor, input_factor, tn, cast_matmul_to_bf16)
        grid = (grid_rows, H // tn)
        in_specs = [
            pl.BlockSpec((tm, H), lambda i, j: (i, 0)),    # x rows, resident across j
            pl.BlockSpec((H, tn), lambda i, j: (0, j)),    # W column panel, streamed
            pl.BlockSpec((1, tn), lambda i, j: (0, j)),    # bias panel
        ]
        out_specs = pl.BlockSpec((tm, tn), lambda i, j: (i, j))
        dims = ("parallel", "parallel")
    else:
        kernel = _make_kernel(module_factor, input_factor, cast_matmul_to_bf16)
        grid = (grid_rows,)
        in_specs = [
            pl.BlockSpec((tm, H), lambda i: (i, 0)),                              # pipelined
            pl.BlockSpec((H, H), lambda i: (0, 0), pipeline_mode=pl.Buffered(1)),  # resident
            pl.BlockSpec((1, H), lambda i: (0, 0), pipeline_mode=pl.Buffered(1)),  # resident
        ]
        out_specs = pl.BlockSpec((tm, H), lambda i: (i, 0))
        dims = ("parallel",)

    out = pl.pallas_call(
        kernel,
        out_shape=jax.ShapeDtypeStruct((rows, H), dtype),
        grid_spec=pl.GridSpec(grid=grid, in_specs=in_specs, out_specs=out_specs),
        compiler_params=pltpu.CompilerParams(
            dimension_semantics=dims,
            vmem_limit_bytes=int(budget),
        ),
    )(x2, w, b2)

    return out.reshape(B, S, H)


if __name__ == "__main__":
    key = jax.random.PRNGKey(0)
    kx, kw, kb = jax.random.split(key, 3)

    # Small shapes consistent with the module's forward: (batch, seq, hidden)
    B, S, H = 2, 8, 32
    module_factor = 0.5     # Conformer half-step FF residual
    input_factor = 1.0

    x = jax.random.normal(kx, (B, S, H), dtype=jnp.float32)
    w = jax.random.normal(kw, (H, H), dtype=jnp.float32) * (1.0 / jnp.sqrt(H))
    b = jax.random.normal(kb, (H,), dtype=jnp.float32) * 0.01

    def ref_fn(xa, wa, ba, mf, inf):
        r, h = xa.shape[0] * xa.shape[1], xa.shape[2]
        xf = xa.reshape(r, h).astype(jnp.float32)
        y = jax.lax.dot_general(xf, wa.astype(jnp.float32), (((1,), (0,)), ((), ())),
                                precision=jax.lax.Precision.HIGHEST)
        y = (y + ba.astype(jnp.float32)) * mf + xf * inf
        return y.reshape(xa.shape)

    # 1) f32, multi-step row grid
    out = jax.block_until_ready(residual_connection_forward(
        x, w, b, module_factor=module_factor, input_factor=input_factor, row_tile=8))
    assert jnp.allclose(out, ref_fn(x, w, b, module_factor, input_factor),
                        atol=2e-2, rtol=2e-2), "f32 mismatch"

    # 2) generic input_factor (the previously failing variant)
    out2 = jax.block_until_ready(residual_connection_forward(
        x, w, b, module_factor=module_factor, input_factor=0.5, row_tile=8))
    assert jnp.allclose(out2, ref_fn(x, w, b, module_factor, 0.5),
                        atol=2e-2, rtol=2e-2), "f32 (input_factor=0.5) mismatch"

    # 3) input_factor = 0 (module-only path)
    out3 = jax.block_until_ready(residual_connection_forward(
        x, w, b, module_factor=module_factor, input_factor=0.0, row_tile=8))
    assert jnp.allclose(out3, ref_fn(x, w, b, module_factor, 0.0),
                        atol=2e-2, rtol=2e-2), "f32 (input_factor=0) mismatch"

    # 4) ragged row count (grid = cdiv(rows, tm), masked tail stores)
    xr = x[:, :7, :]
    outr = jax.block_until_ready(residual_connection_forward(
        xr, w, b, module_factor=module_factor, input_factor=input_factor, row_tile=8))
    assert jnp.allclose(outr, ref_fn(xr, w, b, module_factor, input_factor),
                        atol=2e-2, rtol=2e-2), "ragged-rows mismatch"

    # 5) bf16 activations / weights, f32 accumulation
    out_bf = jax.block_until_ready(residual_connection_forward(
        x.astype(jnp.bfloat16), w.astype(jnp.bfloat16), b.astype(jnp.bfloat16),
        module_factor=module_factor, input_factor=input_factor, row_tile=8))
    assert jnp.allclose(out_bf.astype(jnp.float32),
                        ref_fn(x, w, b, module_factor, input_factor),
                        atol=1e-1, rtol=1e-1), "bf16 mismatch"

    # 6) N-tiled (streamed-W) path, exercised at a small lane-aligned H
    H2 = 256
    x2 = jax.random.normal(kx, (B, S, H2), dtype=jnp.float32)
    w2 = jax.random.normal(kw, (H2, H2), dtype=jnp.float32) * (1.0 / jnp.sqrt(H2))
    b2 = jax.random.normal(kb, (H2,), dtype=jnp.float32) * 0.01
    out_nt = jax.block_until_ready(residual_connection_forward(
        x2, w2, b2, module_factor=module_factor, input_factor=input_factor,
        row_tile=8, col_tile=128))
    assert jnp.allclose(out_nt, ref_fn(x2, w2, b2, module_factor, input_factor),
                        atol=2e-2, rtol=2e-2), "N-tiled mismatch"

    # 7) opt-in bf16 MXU contraction for f32 inputs (loose tolerance)
    out_c = jax.block_until_ready(residual_connection_forward(
        x2, w2, b2, module_factor=module_factor, input_factor=input_factor,
        row_tile=8, cast_matmul_to_bf16=True))
    assert jnp.allclose(out_c, ref_fn(x2, w2, b2, module_factor, input_factor),
                        atol=1e-1, rtol=1e-1), "bf16-contraction mismatch"

    print("KERNEL_OK")
</pallas_src>

<mosaic_0001>
module attributes {stable_mosaic.version = 11 : i64} {
  func.func @kernel(%arg0: i32, %arg1: memref<8x32xf32, #tpu.memory_space<vmem>>, %arg2: memref<32x32xf32, #tpu.memory_space<vmem>>, %arg3: memref<1x32xf32, #tpu.memory_space<vmem>>, %arg4: memref<8x32xf32, #tpu.memory_space<vmem>>) attributes {dimension_semantics = [#tpu.dimension_semantics<parallel>], iteration_bounds = array<i64: 2>, scalar_prefetch = 0 : i64, scratch_operands = 0 : i64, tpu.core_type = #tpu.core_type<tc>, window_params = [{transform_indices = @transform_0, window_bounds = array<i64: 8, 32>}, {pipeline_mode = #tpu.pipeline_mode<synchronous>, transform_indices = @transform_1, window_bounds = array<i64: 32, 32>}, {pipeline_mode = #tpu.pipeline_mode<synchronous>, transform_indices = @transform_2, window_bounds = array<i64: 1, 32>}, {transform_indices = @transform_3, window_bounds = array<i64: 8, 32>}]} {
    %c0 = arith.constant 0 : index
    %c0_0 = arith.constant 0 : index
    %0 = vector.load %arg1[%c0, %c0_0] : memref<8x32xf32, #tpu.memory_space<vmem>>, vector<8x32xf32>
    %c0_1 = arith.constant 0 : index
    %c0_2 = arith.constant 0 : index
    %1 = vector.load %arg2[%c0_1, %c0_2] : memref<32x32xf32, #tpu.memory_space<vmem>>, vector<32x32xf32>
    %cst = arith.constant dense<0.000000e+00> : vector<8x32xf32>
    %2 = tpu.matmul %0, %1, %cst {dimension_numbers = #tpu.dot_dimension_numbers<[1], [0], [0], [1], [0, 0, 1, 1], [], []>} : vector<8x32xf32>, vector<32x32xf32>, vector<8x32xf32> -> vector<8x32xf32>
    %c0_3 = arith.constant 0 : index
    %c0_4 = arith.constant 0 : index
    %3 = vector.load %arg3[%c0_3, %c0_4] : memref<1x32xf32, #tpu.memory_space<vmem>>, vector<1x32xf32>
    %4 = vector.broadcast %3 : vector<1x32xf32> to vector<8x32xf32>
    %5 = arith.addf %2, %4 : vector<8x32xf32>
    %cst_5 = arith.constant 5.000000e-01 : f32
    %6 = vector.broadcast %cst_5 : f32 to vector<8x32xf32>
    %7 = arith.mulf %5, %6 : vector<8x32xf32>
    %8 = arith.addf %7, %0 : vector<8x32xf32>
    %c0_6 = arith.constant 0 : index
    %c0_7 = arith.constant 0 : index
    %9 = vector.load %arg4[%c0_6, %c0_7] : memref<8x32xf32, #tpu.memory_space<vmem>>, vector<8x32xf32>
    tpu.vector_store %arg4[%c0_6, %c0_7], %8 {strides = array<i32>} : memref<8x32xf32, #tpu.memory_space<vmem>>, vector<8x32xf32>,
    return
  }
  func.func @transform_0(%arg0: i32) -> (i32, i32) {
    %c0_i32 = arith.constant 0 : i32
    %c0_i32_0 = arith.constant 0 : i32
    return %arg0, %c0_i32 : i32, i32
  }
  func.func @transform_1(%arg0: i32) -> (i32, i32) {
    %c0_i32 = arith.constant 0 : i32
    %c0_i32_0 = arith.constant 0 : i32
    %c0_i32_1 = arith.constant 0 : i32
    return %c0_i32, %c0_i32_0 : i32, i32
  }
  func.func @transform_2(%arg0: i32) -> (i32, i32) {
    %c0_i32 = arith.constant 0 : i32
    %c0_i32_0 = arith.constant 0 : i32
    %c0_i32_1 = arith.constant 0 : i32
    return %c0_i32, %c0_i32_0 : i32, i32
  }
  func.func @transform_3(%arg0: i32) -> (i32, i32) {
    %c0_i32 = arith.constant 0 : i32
    %c0_i32_0 = arith.constant 0 : i32
    return %arg0, %c0_i32 : i32, i32
  }
}

</mosaic_0001>

<bundles_post_ra>
// kernel: tpu_custom_call.1
= control target key start
LH: loop header
LB: loop body
LE: loop exit
PB: predicated region body
PF: predicated region fallthrough
CT: control target
= control target key end

     0   :  { %8 = vsyncpa [#allocation3], 0  ;;  %s841_s0 = inlined_call_operand.hbm [shape: f32[16,32], index: 0, kind: input, shape index: {}]   ;;  %s842_s1 = inlined_call_operand.hbm [shape: f32[32,32], index: 1, kind: input, shape index: {}]   ;;  %s843_s2 = inlined_call_operand.vmem [shape: f32[1,32], index: 2, kind: input, shape index: {}]   ;;  %s844_s3 = inlined_call_operand.hbm [shape: f32[16,32], index: 3, kind: output, shape index: {}]  }
   0x1   :  { %10 = vsyncpa [#allocation3 + $0x1], 0 }
   0x2   :  { %11 = vsyncpa [#allocation6], 0 }
   0x3   :  { %12 = vsyncpa [#allocation4], 0 }
   0x4   :  { %14 = vsyncpa [#allocation4 + $0x1], 0  ;;  %s642_s12 = smov 0   ;;  %s644_s13 = smov 0  }
   0x5   :  { %s646_s14 = smov 0   ;;  %s648_s15 = smov 0  }
   0x6 LB: > { %s663_s16 = sadd.s32 4294967295, %s612_s15   ;;  %s384_s17 = sadd.s32 4294967294, %s612_s15   ;;  %s612_s15 = sphi %s648_s15, %s864_s15   ;;  %s608_s14 = sphi %s646_s14, %s863_s14   ;;  %s604_s13 = sphi %s644_s13, %s862_s13   ;;  %s600_s12 = sphi %s642_s12, %s861_s12  }
   0x7   : > { %p40_p0 = scmp.ne.s32.totalorder %s604_s13, %s600_s12  ;;  %p845_p1 = scmp.eq.s32.totalorder %s663_s16, 0 }
   0x8   : > { %p112_p3 = scmp.eq.s32.totalorder %s384_s17, 1  ;;  %p385_p5 = scmp.ge.s32.totalorder %s612_s15, 1 }
   0x9   : > { %p672_p4 = por %p845_p1, %p40_p0  ;;  %p119_p7 = scmp.lt.s32.totalorder %s612_s15, 3 }
   0xa   : > { %p677_p6 = por %p112_p3, %p40_p0  ;;  %s614_s21 = smov [#allocation5]  }
   0xb   : > { %s848_s18 = scalar_select %p672_p4, 1, 0 }
   0xc   : > { %s849_s19 = scalar_select %p677_p6, 1, 0 }
   0xd   : > { %p682_p8 = pnand %p385_p5, %p119_p7  ;;  %s131_s22 = sshll.u32 %s614_s21, 4  ;;  %s686_s22 = int_to_ptr.vmem [resolvable:$true] %s131_s22 }
   0xe   : > { %s698_s24 = sadd.s32 1, %s612_s15   ;;  %s27_s25 = sadd.s32 1, %s608_s14 }
   0xf   : > { %s850_s20 = scalar_select %p682_p8, 1, 0 }
  0x10   : > { %p430_p9 = pneg %p682_p8  ;;  %s24_s26 = ssub.s32 %s612_s15, %s698_s24 }
  0x11   : > { %s484_s29 = scalar_lea.hbm %s842_s1, 512 }
  0x12   : > { %p693_p11 = pnand %p430_p9, %p845_p1  ;;  %p485_p12 = scmp.ne.s32.totalorder %s842_s1, %s484_s29 }
  0x13   : > { %p491_p5 = scmp.lt.u32.totalorder %s484_s29, %s842_s1 }
  0x14   : > { %p486_p13 = pneg %p693_p11 }
  0x16   : > { %p487_p0 = pnand %p486_p13, %p485_p12 }
  0x18   : > { %p488_p3 = pneg %p487_p0 }
  0x1a   : > { %p493_p7 = pnand %p491_p5, %p488_p3 }
  0x1c   : > { %496 = shalt.err (!%p493_p7)
}
  0x1d   : > { %s497_s7 = scalar_lea.vmem %s686_s22, 512  ;;  %p505_p2 = scmp.lt.s32.totalorder %s686_s22, %s686_s22 }
  0x1e   : > { %p498_p9 = scmp.ne.s32.totalorder %s686_s22, %s497_s7  ;;  %p506_p6 = scmp.lt.s32.totalorder %s497_s7, %s497_s7 }
  0x20   : > { %p500_p10 = pnand %p498_p9, %p486_p13  ;;  %p507_p4 = por %p506_p6, %p505_p2 }
  0x22   : > { %p501_p1 = pneg %p500_p10 }
  0x24   : > { %p508_p8 = pnand %p507_p4, %p501_p1 }
  0x26   : > { %511 = shalt.err (!%p508_p8)
}
  0x27   : > { %s615_s8 = smov 128   ;;  %s616_s9 = smov 8  }
  0x28   : > { %433 = dma.hbm_to_vmem [thread:$0]  (!%p693_p11), %s842_s1, 512, %s686_s22, [#allocation6], %s615_s8, %s615_s8, %s616_s9  }
  0x29   : > { %p25_p2 = scmp.eq.s32.totalorder %s24_s26, 0  ;;  %p34_p1 = scmp.ne.s32.totalorder %s608_s14, %s604_s13 }
  0x2a   : > { %p35_p4 = scmp.eq.s32.totalorder %s612_s15, 0  ;;  %p443_p6 = scmp.lt.s32.totalorder %s612_s15, 2 }
  0x2b   : > { %s729_s17 = scalar_select %p25_p2, %s608_s14, %s27_s25  }
  0x2c   : > { %p36_p8 = por %p35_p4, %p34_p1  ;;  %p852_p10 = scmp.eq.s32.totalorder %s663_s16, 1 }
  0x2d   : > { %s148_s27 = sand.u32 1, %s608_s14   ;;  %s389_s28 = sshll.u32 %s612_s15, 7 }
  0x2e   : > { %p733_p12 = por %p852_p10, %p34_p1  ;;  %s388_s29 = sshll.u32 %s148_s27, 3 }
  0x2f   : > { %s742_s4 = scalar_lea.hbm %s841_s0, %s389_s28  ;;  %s152_s22 = scalar_lea.vmem [#allocation2], %s388_s29 }
  0x30   : > { %s159_s25 = sshll.u32 %s152_s22, 4  ;;  %p744_p11 = pnand %p443_p6, %p36_p8  ;;  %s748_s25 = int_to_ptr.vmem [resolvable:$true] %s159_s25 }
  0x31   : > { %s149_s5 = scalar_lea.sflag [#allocation3], %s148_s27  ;;  %s512_s6 = scalar_lea.hbm %s742_s4, 128 }
  0x32   : > { %p513_p13 = scmp.ne.s32.totalorder %s742_s4, %s512_s6  ;;  %p514_p0 = pneg %p744_p11 }
  0x33   : > { %s517_s9 = scalar_lea.hbm %s841_s0, 256  ;;  %p518_p7 = scmp.lt.u32.totalorder %s742_s4, %s841_s0 }
  0x34   : > { %p515_p3 = pnand %p514_p0, %p513_p13  ;;  %p519_p9 = scmp.lt.u32.totalorder %s517_s9, %s512_s6 }
  0x35   : > { %p521_p1 = scmp.lt.u32.totalorder %s512_s6, %s742_s4 }
  0x36   : > { %p516_p5 = pneg %p515_p3  ;;  %p520_p2 = por %p519_p9, %p518_p7 }
  0x38   : > { %p522_p4 = por %p521_p1, %p520_p2 }
  0x3a   : > { %p523_p6 = pnand %p522_p4, %p516_p5 }
  0x3c   : > { %526 = shalt.err (!%p523_p6)
}
  0x3d   : > { %s527_s27 = scalar_lea.vmem %s748_s25, 128  ;;  %s617_s28 = smov [#allocation2]  }
  0x3e   : > { %p528_p8 = scmp.ne.s32.totalorder %s748_s25, %s527_s27  ;;  %s532_s29 = sshll.u32 %s617_s28, 4  ;;  %s533_s29 = int_to_ptr.vmem [resolvable:$false] %s532_s29 }
  0x3f   : > { %s534_s23 = scalar_lea.vmem %s533_s29, 256  ;;  %p535_p3 = scmp.lt.s32.totalorder %s748_s25, %s533_s29 }
  0x40   : > { %p530_p10 = pnand %p528_p8, %p514_p0  ;;  %p536_p7 = scmp.lt.s32.totalorder %s534_s23, %s527_s27 }
  0x42   : > { %p531_p13 = pneg %p530_p10  ;;  %p537_p9 = por %p536_p7, %p535_p3 }
  0x44   : > { %p538_p2 = pnand %p537_p9, %p531_p13 }
  0x46   : > { %541 = shalt.err (!%p538_p2)
}
  0x47   : > { %437 = dma.hbm_to_vmem [thread:$0]  (!%p744_p11), %s742_s4, 128, %s748_s25, %s149_s5  }
  0x48   : > { %p855_p5 = scmp.ne.s32.totalorder %s850_s20, 0 }
  0x49   : > { %s778_s30 = sand.u32 (!%p855_p5), 1, %s604_s13   ;;  %p856_p0 = scmp.ne.s32.totalorder (!%p855_p5), %s848_s18, 0 }
  0x4a   : > { %168 = sbr.rel (%p855_p5) target bundleno = 327 (0x147), region = 32  ;;  %s391_s22 = sshll.u32 (!%p855_p5), %s778_s30, 3 }
  0x4b   : > { %s171_s6 = scalar_lea.sflag (!%p855_p5), [#allocation3], %s778_s30  ;;  %s174_s7 = scalar_lea.vmem (!%p855_p5), [#allocation2], %s391_s22 }
  0x51   : > { %587 = dma.done.wait (%p856_p0), %s171_s6, 128  }
  0x52   : > { %589 = vsyncadd (%p856_p0), %s171_s6, 4294967168  ;;  %p857_p1 = scmp.eq.s32.totalorder %s663_s16, 0 }
  0x54   : > { %591 = dma.done.wait (%p857_p1), [#allocation6], 512   ;;  %p858_p11 = pmov %p857_p1 }
  0x55   : > { %v618_v0 = vmov 0.0|0.0   ;;  %vm619_vm0 = vmmov 0   ;;  %v620_v1 = vmov 0.0   ;;  %v202_v2 = vld [vmem:[#allocation5] sm:$0xff]  ;;  %v203_v3 = vld [vmem:[#allocation5 + $0x8] sm:$0xff]  ;;  %v204_v4 = vld [vmem:[#allocation5 + $0x10] sm:$0xff] }
  0x56   : > { %593 = vsyncadd (%p858_p11), [#allocation6], 4294966784  ;;  %416 = vmatprep.subr.bf16.mxu0 %v618_v0  ;;  %413 = vmatprep.mubr.msk.f32.mxu0 %vm619_vm0, %v620_v1  ;;  %v417_v5 = vpack.c.bf16 %v203_v3, %v202_v2  ;;  %v205_v6 = vld [vmem:[#allocation5 + $0x18] sm:$0xff]  ;;  %vm213_vm1 = vcmask 261120   ;;  %v394_v9 = vld [vmem:[%s843_s2] ss:$0 sm:$0xff] }
  0x57   : > { %v420_v7 = vpack.c.bf16 %v205_v6, %v204_v4  ;;  %v201_v8 = vld [vmem:[%s174_s7] sm:$0xff]  ;;  %s397_s4 = sshll.u32 %s663_s16, 7  ;;  %s200_s25 = scalar_lea.vmem [#allocation7], %s391_s22 }
  0x58   : > { %418 = vmatpush3.bf16.msra.mxu0 %v417_v5  ;;  %s304_s26 = sshll.u32 %s200_s25, 4  ;;  %s797_s9 = scalar_lea.hbm %s844_s3, %s397_s4  ;;  %s799_s26 = int_to_ptr.vmem [resolvable:$true] %s304_s26 }
  0x59   : > { %419 = vmatprep.subr.bf16.mxu0 %v618_v0  ;;  %s291_s10 = scalar_lea.sflag [#allocation4], %s778_s30  ;;  %s542_s11 = scalar_lea.vmem %s799_s26, 128 }
  0x5a   : > { %p543_p4 = scmp.ne.s32.totalorder %s799_s26, %s542_s11  ;;  %s621_s16 = smov [#allocation7]  }
  0x5b   : > { %s546_s27 = sshll.u32 %s621_s16, 4  ;;  %s547_s27 = int_to_ptr.vmem [resolvable:$false] %s546_s27 }
  0x5c   : > { %421 = vmatpush3.bf16.msra.mxu0 %v420_v7  ;;  %p544_p6 = pnand %p543_p4, %p733_p12  ;;  %s548_s28 = scalar_lea.vmem %s547_s27, 256 }
  0x5d   : > { %p549_p10 = scmp.lt.s32.totalorder %s799_s26, %s547_s27  ;;  %p550_p13 = scmp.lt.s32.totalorder %s548_s28, %s542_s11 }
  0x5e   : > { %p545_p8 = pneg %p544_p6 }
  0x5f   : > { %414 = vmatmul.mubr.msk.f32.vlgmr.msra.gmra.mrb[0].mxu0 %vm213_vm1, %v201_v8  ;;  %p551_p3 = por %p550_p13, %p549_p10 }
  0x61   : > { %p552_p7 = pnand %p551_p3, %p545_p8 }
 0x132   : > { %v283_v10 = vpop.f32.mrb[0].mxu0 }
 0x133   : > { %v284_v11 = vadd.f32 %v394_v9, %v283_v10  ;;  %v415_v12 = vpop.f32.mrb[1].mxu0 }
 0x135   : > { %v287_v13 = vmul.f32 0.5, %v284_v11 }
 0x137   : > { %v288_v14 = vadd.f32 %v287_v13, %v201_v8 }
 0x139   : > { %289 = vst.msk [vmem:[%s200_s25] sm:$0xff] %vm213_vm1, %v288_v14 }
 0x13a   : > { %555 = shalt.err (!%p552_p7)
}
 0x13b   : > { %s556_s29 = scalar_lea.hbm %s797_s9, 128  ;;  %s560_s22 = scalar_lea.hbm %s844_s3, 256 }
 0x13c   : > { %p557_p9 = scmp.ne.s32.totalorder %s797_s9, %s556_s29  ;;  %p561_p0 = scmp.lt.u32.totalorder %s797_s9, %s844_s3 }
 0x13d   : > { %p562_p1 = scmp.lt.u32.totalorder %s560_s22, %s556_s29  ;;  %p564_p4 = scmp.lt.u32.totalorder %s556_s29, %s797_s9 }
 0x13e   : > { %p558_p2 = pnand %p557_p9, %p733_p12 }
 0x13f   : > { %p563_p11 = por %p562_p1, %p561_p0 }
 0x140   : > { %p559_p5 = pneg %p558_p2 }
 0x141   : > { %p565_p6 = por %p564_p4, %p563_p11 }
 0x143   : > { %p566_p8 = pnand %p565_p6, %p559_p5 }
 0x145   : > { %569 = shalt.err (!%p566_p8)
}
 0x146   : > { %428 = dma.vmem_to_hbm [thread:$0]  (%p733_p12), %s799_s26, 128, %s797_s9, %s291_s10  }
 0x147 PF: > { %s316_s18 = sand.u32 1, %s600_s12   ;;  %p859_p10 = scmp.ne.s32.totalorder %s849_s19, 0 }
 0x148   : > { %p860_p13 = scmp.ge.s32.totalorder %s612_s15, 2  ;;  %s317_s20 = scalar_lea.sflag [#allocation4], %s316_s18 }
 0x14a   : > { %p439_p3 = pnand %p860_p13, %p859_p10 }
 0x14c   : > { %595 = dma.done.wait (!%p439_p3), %s317_s20, 128  }
 0x14d   : > { %597 = vsyncadd (!%p439_p3), %s317_s20, 4294967168  ;;  %p17_p7 = scmp.ge.s32.totalorder %s698_s24, 4   ;;  %s861_s12 = smov %s604_s13 }
 0x14e   : > { %s862_s13 = smov %s608_s14  ;;  %s863_s14 = smov %s729_s17 }
 0x14f   : > { %s864_s15 = smov %s698_s24  ;;  %19 = sbr.rel (!%p17_p7) target bundleno = 6 (0x6), region = 81 }
 0x156   :  { %322 = vsyncpa [#allocation3], 1 }
 0x157   :  { %324 = vsyncpa [#allocation3 + $0x1], 1 }
 0x158   :  { %325 = vsyncpa [#allocation6], 1 }
 0x159   :  { %326 = vsyncpa [#allocation4], 1 }
 0x15a   :  { %328 = vsyncpa [#allocation4 + $0x1], 1 }

</bundles_post_ra>
